<compile_context>
chip_gen: v7x
topology: tpu7x:2x2x1
jax: 0.10.0
libtpu: 0.0.40
codegen_flags: <defaults>
</compile_context>

<pallas_src>
import jax
import jax.numpy as jnp
from jax import lax
from jax.experimental import pallas as pl
from jax.experimental.pallas import tpu as pltpu


# ----------------------------------------------------------------------------
# Kernel 1: Conv2d(kernel=(k,E)) + ReLU + fused LSTM input projection
#           (both directions), all as 2D MXU matmuls on the time-major
#           flattened embedding.  No im2col tensor is ever materialised.
# ----------------------------------------------------------------------------
def conv_proj_kernel(emb_ref, cw_ref, cb_ref, wih_ref, bl_ref, xg_ref):
    # emb_ref: (T*B, E)    bf16  (time-major flatten: row = t*B + b)
    # cw_ref : (k, E, C)   bf16
    # cb_ref : (1, C)      f32
    # wih_ref: (2, C, 4H)  bf16  (gate order i, f, g, o along last dim)
    # bl_ref : (2, 1, 4H)  f32   (b_ih + b_hh, folded in here)
    # xg_ref : (2, Tp*B, 4H) f32
    TB, E = emb_ref.shape
    k, _, C = cw_ref.shape
    TpB = xg_ref.shape[1]                     # Tp * B
    B = TB // (TpB // (TB // (TpB // 1)) if False else 1)  # unused; kept simple below

    # Conv as a sum of k shifted matmuls (static unroll, k is small).
    acc = jnp.zeros((TpB, C), jnp.float32)
    shift = (TB - TpB) // (k - 1) if k > 1 else 0   # = B (batch stride per time step)
    for j in range(k):
        xj = emb_ref[j * shift: j * shift + TpB]    # (Tp*B, E) bf16, static slice
        acc = acc + jnp.dot(xj, cw_ref[j], preferred_element_type=jnp.float32)
    conv = jnp.maximum(acc + cb_ref[...], 0.0)      # ReLU, f32
    conv_bf = conv.astype(jnp.bfloat16)

    # LSTM input projection per direction, hoisted out of the recurrence.
    for d in range(2):                               # static unroll
        xg_ref[d] = (jnp.dot(conv_bf, wih_ref[d],
                             preferred_element_type=jnp.float32)
                     + bl_ref[d])


def conv_input_proj(emb_flat, conv_w, conv_b, wih_cat, b_cat, *, B):
    TB, _ = emb_flat.shape
    k = conv_w.shape[0]
    T = TB // B
    Tp = T - k + 1
    H4 = wih_cat.shape[2]
    return pl.pallas_call(
        conv_proj_kernel,
        out_shape=jax.ShapeDtypeStruct((2, Tp * B, H4), jnp.float32),
    )(emb_flat, conv_w, conv_b, wih_cat, b_cat)


# ----------------------------------------------------------------------------
# Kernel 2: LSTM recurrence only (gates pre-projected), one grid step per
#           direction (parallel axis -> 2 TensorCores on v7x).
# ----------------------------------------------------------------------------
def bilstm_kernel(xg_ref, whh_ref, out_ref):
    # xg_ref : (Tp, B, 4H) f32   precomputed x @ Wih + b for this direction
    # whh_ref: (H, 4H)     bf16
    # out_ref: (Tp, B, H)  f32
    Tp, B, H4 = xg_ref.shape
    H = H4 // 4
    d = pl.program_id(0)                      # 0 = forward, 1 = backward
    whh = whh_ref[...]                        # hoisted out of the loop (bf16)

    def sig(v):                               # sigmoid via tanh (EUP slot)
        return 0.5 * jnp.tanh(0.5 * v) + 0.5

    def step(s, carry):
        h, c = carry
        t = jnp.where(d == 0, s, Tp - 1 - s)  # reverse time for backward dir
        gates = xg_ref[t] + jnp.dot(h.astype(jnp.bfloat16), whh,
                                    preferred_element_type=jnp.float32)
        i = sig(gates[:, 0 * H:1 * H])        # PyTorch gate order: i, f, g, o
        f = sig(gates[:, 1 * H:2 * H])
        g = jnp.tanh(gates[:, 2 * H:3 * H])
        o = sig(gates[:, 3 * H:4 * H])
        c = f * c + i * g
        h = o * jnp.tanh(c)
        out_ref[t] = h
        return (h, c)

    h0 = jnp.zeros((B, H), jnp.float32)
    c0 = jnp.zeros((B, H), jnp.float32)
    lax.fori_loop(0, Tp, step, (h0, c0))


def bilstm(xg, whh_cat):
    # TODO(synk): for large T, tile the time axis with an "arbitrary" grid dim,
    # carry (h, c) in VMEM scratch and raise vmem_limit_bytes so the working
    # set fits v7x's 64 MiB VMEM; not needed at these small demo shapes.
    _, Tp, B, H4 = xg.shape
    H = H4 // 4
    return pl.pallas_call(
        bilstm_kernel,
        grid=(2,),
        in_specs=[
            pl.BlockSpec((None, Tp, B, H4), lambda d: (d, 0, 0, 0)),
            pl.BlockSpec((None, H, H4), lambda d: (d, 0, 0)),
        ],
        out_specs=pl.BlockSpec((None, Tp, B, H), lambda d: (d, 0, 0, 0)),
        out_shape=jax.ShapeDtypeStruct((2, Tp, B, H), jnp.float32),
        compiler_params=pltpu.CompilerParams(
            dimension_semantics=("parallel",)),   # fwd/bwd across TCs on v7x
    )(xg, whh_cat)


# ----------------------------------------------------------------------------
# Kernel 3: attention (S1 -> tanh -> S2 -> softmax over time -> weighted sum)
#           + MLP1/ReLU + MLP2/sigmoid.  Whole batch in one grid step
#           (static unroll over B) to amortise per-step overhead.
# ----------------------------------------------------------------------------
def attn_mlp_kernel(h_ref, s1_ref, s2_ref, w1_ref, b1_ref, w2_ref, b2_ref, o_ref):
    B, Tp, H2 = h_ref.shape
    for b in range(B):                                                 # static
        Hmat = h_ref[b]                                                # (Tp, 2H)
        h1 = jnp.tanh(jnp.dot(Hmat, s1_ref[...],
                              preferred_element_type=jnp.float32))     # (Tp, ctx)
        h2 = jnp.dot(h1, s2_ref[...],
                     preferred_element_type=jnp.float32)               # (Tp, 1)
        # softmax over the time axis (PyTorch softmax(dim=1) on (B, T', 1))
        h2 = h2 - jnp.max(h2, axis=0, keepdims=True)
        e = jnp.exp(h2)
        a = e * pl.reciprocal(jnp.sum(e, axis=0, keepdims=True),
                              approx=True)                             # (Tp, 1)
        feat = jnp.sum(a * Hmat, axis=0, keepdims=True)                # (1, 2H)
        m1 = jnp.maximum(
            jnp.dot(feat, w1_ref[...], preferred_element_type=jnp.float32)
            + b1_ref[...], 0.0)                                        # (1, M1)
        logits = (jnp.dot(m1, w2_ref[...], preferred_element_type=jnp.float32)
                  + b2_ref[...])                                       # (1, ncls)
        o_ref[b:b + 1, :] = 0.5 * jnp.tanh(0.5 * logits) + 0.5         # sigmoid


def attn_mlp(Hout, s1_t, s2_t, w1_t, b1, w2_t, b2):
    B = Hout.shape[0]
    ncls = w2_t.shape[1]
    return pl.pallas_call(
        attn_mlp_kernel,
        out_shape=jax.ShapeDtypeStruct((B, ncls), jnp.float32),
    )(Hout, s1_t, s2_t, w1_t, b1, w2_t, b2)


# ----------------------------------------------------------------------------
# Full forward pass
# ----------------------------------------------------------------------------
def c_lstm_forward(batch_data, params, *, kernel_size):
    emb_table = params["embedding"]                      # (V, E)
    B, T = batch_data.shape
    k = kernel_size
    assert T >= k, "sequence length must be >= conv kernel size"
    Tp = T - k + 1

    # embedding lookup (dropout = identity at inference), time-major + bf16
    embed = jnp.take(emb_table, batch_data, axis=0)                  # (B, T, E)
    emb_flat = (jnp.transpose(embed, (1, 0, 2))
                .astype(jnp.bfloat16)
                .reshape(T * B, -1))                                 # (T*B, E)

    # conv + ReLU + fused LSTM input projection for both directions
    xg_flat = conv_input_proj(emb_flat, params["conv_w"], params["conv_b"],
                              params["wih_cat"], params["b_cat"], B=B)
    H4 = xg_flat.shape[-1]
    xg = xg_flat.reshape(2, Tp, B, H4)                   # layout-preserving

    # recurrent part only; fwd/bwd on a parallel grid axis
    hs = bilstm(xg, params["whh_cat"])                   # (2, Tp, B, H)

    # assemble batch-first bidirectional output (B, Tp, 2H)
    Hout = jnp.transpose(jnp.concatenate([hs[0], hs[1]], axis=-1), (1, 0, 2))

    # attention + MLP head
    predict = attn_mlp(Hout, params["s1_t"], params["s2_t"],
                       params["w1_t"], params["b1"],
                       params["w2_t"], params["b2"])     # (B, class_size)
    return predict


# ----------------------------------------------------------------------------
# Deterministic synthetic parameter construction (no checkpoint load)
# ----------------------------------------------------------------------------
def make_params(key, *, vocab_size, embed_size, kernel_size, kernel_num,
                hidden_size, context_vec_size, mlp1_hidden_size, class_size):
    keys = jax.random.split(key, 12)
    E, k, C, H = embed_size, kernel_size, kernel_num, hidden_size

    emb = 0.1 * jax.random.normal(keys[0], (vocab_size, E), jnp.float32)
    emb = emb.at[0].set(0.0)                              # padding row zeroed

    # Conv2d(1, C, (k, E)) weight (C, 1, k, E) -> (k, E, C) for shifted matmuls
    conv_w = 0.1 * jax.random.normal(keys[1], (C, k, E), jnp.float32)
    conv_w = jnp.transpose(conv_w, (1, 2, 0)).astype(jnp.bfloat16)    # (k, E, C)
    conv_b = 0.1 * jax.random.normal(keys[2], (1, C), jnp.float32)

    # bidirectional LSTM, fused gates (i, f, g, o) along the last dim
    wih_cat = 0.1 * jax.random.normal(keys[3], (2, C, 4 * H), jnp.float32)
    whh_cat = 0.1 * jax.random.normal(keys[4], (2, H, 4 * H), jnp.float32)
    b_cat = 0.1 * jax.random.normal(keys[5], (2, 1, 4 * H), jnp.float32)  # b_ih+b_hh

    s1_t = 0.1 * jax.random.normal(keys[6], (2 * H, context_vec_size), jnp.float32)
    s2_t = 0.1 * jax.random.normal(keys[7], (context_vec_size, 1), jnp.float32)
    w1_t = 0.1 * jax.random.normal(keys[8], (2 * H, mlp1_hidden_size), jnp.float32)
    b1 = jnp.zeros((1, mlp1_hidden_size), jnp.float32)
    w2_t = 0.1 * jax.random.normal(keys[9], (mlp1_hidden_size, class_size), jnp.float32)
    b2 = jnp.zeros((1, class_size), jnp.float32)

    return dict(embedding=emb, conv_w=conv_w, conv_b=conv_b,
                wih_cat=wih_cat.astype(jnp.bfloat16),
                whh_cat=whh_cat.astype(jnp.bfloat16),
                b_cat=b_cat,
                s1_t=s1_t, s2_t=s2_t, w1_t=w1_t, b1=b1, w2_t=w2_t, b2=b2)


if __name__ == "__main__":
    # small shapes consistent with the module
    B, T = 2, 12
    vocab_size, embed_size = 50, 16
    kernel_size, kernel_num = 3, 8          # kernel_sizes="3", only [0] is used
    hidden_size, context_vec_size = 16, 8
    mlp1_hidden_size, class_size = 16, 4

    key = jax.random.PRNGKey(0)
    k_tok, k_par = jax.random.split(key)
    batch_data = jax.random.randint(k_tok, (B, T), 0, vocab_size, dtype=jnp.int32)
    params = make_params(k_par,
                         vocab_size=vocab_size, embed_size=embed_size,
                         kernel_size=kernel_size, kernel_num=kernel_num,
                         hidden_size=hidden_size,
                         context_vec_size=context_vec_size,
                         mlp1_hidden_size=mlp1_hidden_size,
                         class_size=class_size)

    predict = c_lstm_forward(batch_data, params, kernel_size=kernel_size)
    predict = jax.block_until_ready(predict)

    assert predict.shape == (B, class_size)
    assert bool(jnp.all(jnp.isfinite(predict)))
    assert bool(jnp.all((predict >= 0.0) & (predict <= 1.0)))   # sigmoid output
    print("KERNEL_OK")
</pallas_src>

<mosaic_0001>
module attributes {stable_mosaic.version = 11 : i64} {
  func.func @conv_proj_kernel(%arg0: memref<24x16xbf16, #tpu.memory_space<vmem>>, %arg1: memref<3x16x8xbf16, #tpu.memory_space<vmem>>, %arg2: memref<1x8xf32, #tpu.memory_space<vmem>>, %arg3: memref<2x8x64xbf16, #tpu.memory_space<vmem>>, %arg4: memref<2x1x64xf32, #tpu.memory_space<vmem>>, %arg5: memref<2x20x64xf32, #tpu.memory_space<vmem>>) attributes {dimension_semantics = [], scalar_prefetch = 0 : i64, scratch_operands = 0 : i64, tpu.core_type = #tpu.core_type<tc>} {
    %cst = arith.constant 0.000000e+00 : f32
    %0 = vector.broadcast %cst : f32 to vector<20x8xf32>
    %c0 = arith.constant 0 : index
    %c0_0 = arith.constant 0 : index
    %1 = vector.load %arg0[%c0, %c0_0] : memref<24x16xbf16, #tpu.memory_space<vmem>>, vector<20x16xbf16>
    %c0_1 = arith.constant 0 : index
    %c0_2 = arith.constant 0 : index
    %c0_3 = arith.constant 0 : index
    %2 = vector.load %arg1[%c0_1, %c0_2, %c0_3] : memref<3x16x8xbf16, #tpu.memory_space<vmem>>, vector<1x16x8xbf16>
    %3 = vector.shape_cast %2 : vector<1x16x8xbf16> to vector<16x8xbf16>
    %cst_4 = arith.constant dense<0.000000e+00> : vector<20x8xf32>
    %4 = tpu.matmul %1, %3, %cst_4 {dimension_numbers = #tpu.dot_dimension_numbers<[1], [0], [0], [1], [0, 0, 1, 1], [], []>} : vector<20x16xbf16>, vector<16x8xbf16>, vector<20x8xf32> -> vector<20x8xf32>
    %5 = arith.addf %0, %4 : vector<20x8xf32>
    %c2 = arith.constant 2 : index
    %c0_5 = arith.constant 0 : index
    %6 = vector.load %arg0[%c2, %c0_5] : memref<24x16xbf16, #tpu.memory_space<vmem>>, vector<20x16xbf16>
    %c1 = arith.constant 1 : index
    %c0_6 = arith.constant 0 : index
    %c0_7 = arith.constant 0 : index
    %7 = vector.load %arg1[%c1, %c0_6, %c0_7] : memref<3x16x8xbf16, #tpu.memory_space<vmem>>, vector<1x16x8xbf16>
    %8 = vector.shape_cast %7 : vector<1x16x8xbf16> to vector<16x8xbf16>
    %cst_8 = arith.constant dense<0.000000e+00> : vector<20x8xf32>
    %9 = tpu.matmul %6, %8, %cst_8 {dimension_numbers = #tpu.dot_dimension_numbers<[1], [0], [0], [1], [0, 0, 1, 1], [], []>} : vector<20x16xbf16>, vector<16x8xbf16>, vector<20x8xf32> -> vector<20x8xf32>
    %10 = arith.addf %5, %9 : vector<20x8xf32>
    %c4 = arith.constant 4 : index
    %c0_9 = arith.constant 0 : index
    %11 = vector.load %arg0[%c4, %c0_9] : memref<24x16xbf16, #tpu.memory_space<vmem>>, vector<20x16xbf16>
    %c2_10 = arith.constant 2 : index
    %c0_11 = arith.constant 0 : index
    %c0_12 = arith.constant 0 : index
    %12 = vector.load %arg1[%c2_10, %c0_11, %c0_12] : memref<3x16x8xbf16, #tpu.memory_space<vmem>>, vector<1x16x8xbf16>
    %13 = vector.shape_cast %12 : vector<1x16x8xbf16> to vector<16x8xbf16>
    %cst_13 = arith.constant dense<0.000000e+00> : vector<20x8xf32>
    %14 = tpu.matmul %11, %13, %cst_13 {dimension_numbers = #tpu.dot_dimension_numbers<[1], [0], [0], [1], [0, 0, 1, 1], [], []>} : vector<20x16xbf16>, vector<16x8xbf16>, vector<20x8xf32> -> vector<20x8xf32>
    %15 = arith.addf %10, %14 : vector<20x8xf32>
    %c0_14 = arith.constant 0 : index
    %c0_15 = arith.constant 0 : index
    %16 = vector.load %arg2[%c0_14, %c0_15] : memref<1x8xf32, #tpu.memory_space<vmem>>, vector<1x8xf32>
    %17 = vector.broadcast %16 : vector<1x8xf32> to vector<20x8xf32>
    %18 = arith.addf %15, %17 : vector<20x8xf32>
    %cst_16 = arith.constant 0.000000e+00 : f32
    %19 = vector.broadcast %cst_16 : f32 to vector<20x8xf32>
    %20 = arith.maximumf %18, %19 : vector<20x8xf32>
    %21 = arith.truncf %20 : vector<20x8xf32> to vector<20x8xbf16>
    %c0_17 = arith.constant 0 : index
    %c0_18 = arith.constant 0 : index
    %c0_19 = arith.constant 0 : index
    %22 = vector.load %arg3[%c0_17, %c0_18, %c0_19] : memref<2x8x64xbf16, #tpu.memory_space<vmem>>, vector<1x8x64xbf16>
    %23 = vector.shape_cast %22 : vector<1x8x64xbf16> to vector<8x64xbf16>
    %cst_20 = arith.constant dense<0.000000e+00> : vector<20x64xf32>
    %24 = tpu.matmul %21, %23, %cst_20 {dimension_numbers = #tpu.dot_dimension_numbers<[1], [0], [0], [1], [0, 0, 1, 1], [], []>} : vector<20x8xbf16>, vector<8x64xbf16>, vector<20x64xf32> -> vector<20x64xf32>
    %c0_21 = arith.constant 0 : index
    %c0_22 = arith.constant 0 : index
    %c0_23 = arith.constant 0 : index
    %25 = vector.load %arg4[%c0_21, %c0_22, %c0_23] : memref<2x1x64xf32, #tpu.memory_space<vmem>>, vector<1x1x64xf32>
    %26 = vector.shape_cast %25 : vector<1x1x64xf32> to vector<1x64xf32>
    %27 = vector.broadcast %26 : vector<1x64xf32> to vector<20x64xf32>
    %28 = arith.addf %24, %27 : vector<20x64xf32>
    %c0_24 = arith.constant 0 : index
    %c0_25 = arith.constant 0 : index
    %c0_26 = arith.constant 0 : index
    %29 = vector.load %arg5[%c0_24, %c0_25, %c0_26] : memref<2x20x64xf32, #tpu.memory_space<vmem>>, vector<1x20x64xf32>
    %30 = vector.shape_cast %29 : vector<1x20x64xf32> to vector<20x64xf32>
    %31 = vector.shape_cast %28 : vector<20x64xf32> to vector<1x20x64xf32>
    tpu.vector_store %arg5[%c0_24, %c0_25, %c0_26], %31 {strides = array<i32>} : memref<2x20x64xf32, #tpu.memory_space<vmem>>, vector<1x20x64xf32>,
    %c1_27 = arith.constant 1 : index
    %c0_28 = arith.constant 0 : index
    %c0_29 = arith.constant 0 : index
    %32 = vector.load %arg3[%c1_27, %c0_28, %c0_29] : memref<2x8x64xbf16, #tpu.memory_space<vmem>>, vector<1x8x64xbf16>
    %33 = vector.shape_cast %32 : vector<1x8x64xbf16> to vector<8x64xbf16>
    %cst_30 = arith.constant dense<0.000000e+00> : vector<20x64xf32>
    %34 = tpu.matmul %21, %33, %cst_30 {dimension_numbers = #tpu.dot_dimension_numbers<[1], [0], [0], [1], [0, 0, 1, 1], [], []>} : vector<20x8xbf16>, vector<8x64xbf16>, vector<20x64xf32> -> vector<20x64xf32>
    %c1_31 = arith.constant 1 : index
    %c0_32 = arith.constant 0 : index
    %c0_33 = arith.constant 0 : index
    %35 = vector.load %arg4[%c1_31, %c0_32, %c0_33] : memref<2x1x64xf32, #tpu.memory_space<vmem>>, vector<1x1x64xf32>
    %36 = vector.shape_cast %35 : vector<1x1x64xf32> to vector<1x64xf32>
    %37 = vector.broadcast %36 : vector<1x64xf32> to vector<20x64xf32>
    %38 = arith.addf %34, %37 : vector<20x64xf32>
    %c1_34 = arith.constant 1 : index
    %c0_35 = arith.constant 0 : index
    %c0_36 = arith.constant 0 : index
    %39 = vector.load %arg5[%c1_34, %c0_35, %c0_36] : memref<2x20x64xf32, #tpu.memory_space<vmem>>, vector<1x20x64xf32>
    %40 = vector.shape_cast %39 : vector<1x20x64xf32> to vector<20x64xf32>
    %41 = vector.shape_cast %38 : vector<20x64xf32> to vector<1x20x64xf32>
    tpu.vector_store %arg5[%c1_34, %c0_35, %c0_36], %41 {strides = array<i32>} : memref<2x20x64xf32, #tpu.memory_space<vmem>>, vector<1x20x64xf32>,
    return
  }
}

</mosaic_0001>

<bundles_post_ra>
// kernel: tpu_custom_call.1
= control target key start
LH: loop header
LB: loop body
LE: loop exit
PB: predicated region body
PF: predicated region fallthrough
CT: control target
= control target key end

     0   :  { %vm49_vm0 = vcmask 130048   ;;  %vm39_vm1 = vcmask 1046528   ;;  %vm181_vm2 = vcmask 1045504   ;;  %vm278_vm3 = vcmask 1043456   ;;  %s590_s1 = inlined_call_operand.vmem [shape: bf16[3,16,8], index: 1, kind: input, shape index: {}]   ;;  %s591_s0 = inlined_call_operand.vmem [shape: bf16[24,16], index: 0, kind: input, shape index: {}]   ;;  %s592_s3 = inlined_call_operand.vmem [shape: bf16[2,8,64], index: 3, kind: input, shape index: {}]   ;;  %s593_s2 = inlined_call_operand.vmem [shape: f32[1,8], index: 2, kind: input, shape index: {}]   ;;  %s594_s4 = inlined_call_operand.vmem [shape: f32[2,1,64], index: 4, kind: input, shape index: {}]   ;;  %s595_s5 = inlined_call_operand.vmem [shape: f32[2,20,64], index: 5, kind: output, shape index: {}]  }
   0x1   :  { %v482_v0 = vld [vmem:[%s590_s1 + $0x8] sm:$0xff]   ;;  %v483_v1 = vld [vmem:[%s590_s1] sm:$0xff]   ;;  %v488_v7 = vld [vmem:[%s590_s1 + $0x10] sm:$0xff]   ;;  %vm271_vm4 = vcmask 64512   ;;  %vm333_vm5 = vcmask 519168   ;;  %vm330_vm6 = vcmask 523264  }
   0x2   :  { %450 = vmatprep.subr.bf16.mxu0 %v482_v0  ;;  %v22_v2 = vld [vmem:[%s591_s0 + $0x4] sm:$0xf]  ;;  %v26_v3 = vld [vmem:[%s591_s0] sm:$0xe]  ;;  %456 = vmatprep.subr.bf16.mxu1 %v483_v1  ;;  %v490_v13 = vld [vmem:[%s591_s0 + $0x8] ss:$0 sps:$4 sm:$0xff]  }
   0x3   :  { %451 = vmatpush3.bf16.msra.mxu0 %v482_v0  ;;  %v406_v4 = vcombine.low %v26_v3, %v22_v2  ;;  %v485_v5 = vld [vmem:[%s591_s0 + $0x8] ss:$0 sps:$4 sm:$0x77]   ;;  %v21_v6 = vld [vmem:[%s591_s0] sm:$0xf]  ;;  %457 = vmatpush3.bf16.msra.mxu1 %v483_v1  ;;  %v183_v16 = vrot.slane %v490_v13, 2 }
   0x4   :  { %v411_v8 = vcombine.low %v21_v6, %v22_v2  ;;  %v487_v9 = vld [vmem:[%s591_s0 + $0x8] ss:$0 sps:$4 sm:$0x33]   ;;  %v41_v11 = vrot.slane %v485_v5, 1  ;;  %462 = vmatprep.subr.bf16.mxu0 %v488_v7  ;;  %v170_v12 = vld [vmem:[%s591_s0] sm:$0xc] }
   0x5   :  { %v40_v10 = vrot.slane %v406_v4, 1  ;;  %v418_v15 = vcombine.low %v170_v12, %v22_v2  ;;  %v263_v19 = vld [vmem:[%s592_s3] sm:$0xf]  ;;  %v427_v20 = vld [vmem:[%s592_s3 + $0x4] sm:$0xf] }
   0x6   :  { %458 = vmatprep.mubr.msk.bf16.mxu1 %vm49_vm0, %v411_v8  ;;  %480 = vmatprep.subr.msk.bf16.mxu1 %vm278_vm3, %v263_v19  ;;  %v280_v21 = vsel %vm278_vm3, %v263_v19, 0  ;;  %v346_v22 = vsel %vm278_vm3, %v427_v20, 0  ;;  %v423_v35 = vld [vmem:[%s593_s2] ss:$0 sm:$0xff]  ;;  %v429_v51 = vld [vmem:[%s594_s4 + $0x1] ss:$0 sm:$0xff] }
   0x7   :  { %v42_v14 = vsel %vm39_vm1, %v40_v10, %v41_v11  ;;  %459 = vmatmul.mubr.msk.bf16.vlgmr.msra.gmra.mrb[0].mxu1 %vm49_vm0, %v487_v9  ;;  %v182_v17 = vrot.slane %v418_v15, 2  ;;  %v424_v50 = vld [vmem:[%s594_s4] ss:$0 sm:$0xff] }
   0x8   :  { %452 = vmatprep.mubr.msk.bf16.mxu0 %vm49_vm0, %v42_v14  ;;  %469 = vmatpush3.bf16.msra.mxu1 %v280_v21 }
   0x9   :  { %453 = vmatmul.mubr.msk.bf16.vlgmr.msra.gmra.mrb[0].mxu0 %vm49_vm0, %v41_v11  ;;  %v184_v18 = vsel %vm181_vm2, %v182_v17, %v183_v16 }
   0xa   :  { %463 = vmatpush3.bf16.msra.mxu0 %v488_v7  ;;  %464 = vmatprep.mubr.msk.bf16.mxu0 %vm49_vm0, %v184_v18 }
   0xb   :  { %481 = vmatprep.subr.msk.bf16.mxu0 %vm278_vm3, %v427_v20 }
  0x11   :  { %465 = vmatmul.mubr.msk.bf16.vlgmr.msra.gmra.mrb[4].mxu0 %vm49_vm0, %v183_v16 }
  0x12   :  { %475 = vmatpush3.bf16.msra.mxu0 %v346_v22 }
  0xda   :  { %v460_v23 = vpop.f32.mrb[0].mxu1 }
  0xdb   :  { %v156_v24 = vpop.f32.mrb[1].mxu1 }
  0xdc   :  { %v454_v25 = vpop.f32.mrb[0].mxu0  ;;  %v461_v26 = vpop.f32.mrb[2].mxu1 }
  0xdd   :  { %v165_v27 = vadd.f32 %v460_v23, %v454_v25  ;;  %v90_v28 = vpop.f32.mrb[1].mxu0  ;;  %v159_v29 = vpop.f32.mrb[3].mxu1 }
  0xde   :  { %v157_v30 = vadd.f32 %v156_v24, %v90_v28  ;;  %v455_v31 = vpop.f32.mrb[2].mxu0 }
  0xdf   :  { %v93_v32 = vpop.f32.mrb[3].mxu0 }
  0xe0   :  { %v160_v33 = vadd.f32 %v159_v29, %v93_v32 }
  0xe4   :  { %v466_v34 = vpop.f32.mrb[4].mxu0 }
  0xe5   :  { %v247_v36 = vadd.f32 %v466_v34, %v165_v27  ;;  %v231_v37 = vpop.f32.mrb[5].mxu0 }
  0xe6   :  { %v245_v38 = vadd.f32 %v231_v37, %v157_v30  ;;  %v467_v39 = vpop.f32.mrb[6].mxu0 }
  0xe7   :  { %v257_v40 = vadd.f32 %v423_v35, %v247_v36  ;;  %v234_v41 = vpop.f32.mrb[7].mxu0 }
  0xe8   :  { %v255_v42 = vadd.f32 %v423_v35, %v245_v38  ;;  %v246_v43 = vadd.f32 %v234_v41, %v160_v33 }
  0xe9   :  { %v260_v45 = vmax.f32 %v257_v40, 0.0 }
  0xea   :  { %v256_v44 = vadd.f32 %v423_v35, %v246_v43  ;;  %v258_v46 = vmax.f32 %v255_v42, 0.0 }
  0xeb   :  { %v262_v49 = vpack.c.bf16 %v260_v45, %v260_v45 }
  0xec   :  { %v259_v47 = vmax.f32 %v256_v44, 0.0 }
  0xee   :  { %v261_v48 = vpack.c.bf16 %v259_v47, %v258_v46 }
  0xf0   :  { %470 = vmatprep.mubr.msk.bf16.mxu1 %vm271_vm4, %v261_v48  ;;  %476 = vmatprep.mubr.msk.bf16.mxu0 %vm271_vm4, %v261_v48 }
  0xf1   :  { %471 = vmatmul.mubr.msk.bf16.vlgmr.msra.gmra.mrb[4].mxu1 %vm271_vm4, %v262_v49  ;;  %477 = vmatmul.mubr.msk.bf16.vlgmr.msra.gmra.mrb[8].mxu0 %vm271_vm4, %v262_v49 }
 0x1c4   :  { %v472_v52 = vpop.f32.mrb[4].mxu1  ;;  %v478_v53 = vpop.f32.mrb[8].mxu0 }
 0x1c5   :  { %v325_v54 = vadd.f32 %v472_v52, %v424_v50  ;;  %v391_v55 = vadd.f32 %v478_v53, %v429_v51  ;;  %v316_v56 = vpop.f32.mrb[5].mxu1  ;;  %v382_v57 = vpop.f32.mrb[9].mxu0 }
 0x1c6   :  { %v317_v58 = vadd.f32 %v424_v50, %v316_v56  ;;  %v383_v59 = vadd.f32 %v429_v51, %v382_v57  ;;  %v473_v60 = vpop.f32.mrb[6].mxu1  ;;  %v479_v61 = vpop.f32.mrb[10].mxu0 }
 0x1c7   :  { %334 = vst.msk [vmem:[%s595_s5 + $0x10] sm:$0xf] %vm333_vm5, %v325_v54  ;;  %434 = vst.msk [vmem:[%s595_s5 + $0x28] sm:$0xf] %vm333_vm5, %v391_v55  ;;  %v319_v62 = vpop.f32.mrb[7].mxu1  ;;  %v385_v63 = vpop.f32.mrb[11].mxu0 }
 0x1c8   :  { %331 = vst.msk [vmem:[%s595_s5] sm:$0xff] %vm330_vm6, %v317_v58  ;;  %432 = vst.msk [vmem:[%s595_s5 + $0x18] sm:$0xff] %vm330_vm6, %v383_v59  ;;  %v320_v0 = vadd.f32 %v424_v50, %v319_v62  ;;  %v386_v1 = vadd.f32 %v429_v51, %v385_v63 }
 0x1ca   :  { %332 = vst.msk [vmem:[%s595_s5 + $0x8] sm:$0xff] %vm330_vm6, %v320_v0  ;;  %433 = vst.msk [vmem:[%s595_s5 + $0x20] sm:$0xff] %vm330_vm6, %v386_v1 }

</bundles_post_ra>
